<compile_context>
chip_gen: v6e
topology: v6e:2x2x1
jax: 0.10.0
libtpu: 0.0.40
codegen_flags: <defaults>
</compile_context>

<pallas_src>
import functools

import jax
import jax.numpy as jnp
from jax.experimental import pallas as pl
from jax.experimental.pallas import tpu as pltpu

_LANE = 128
_ANCHOR_EVERY = 4                       # exact sin/cos every 4 octaves
_VMEM_FOOTPRINT_BUDGET = 20 * 1024 * 1024   # double-buffered in+out tiles
_VMEM_LIMIT_BYTES = 32 * 1024 * 1024        # explicit: >16MiB v5e default, <=v7x
_MAX_TILE_ROWS = 4096


def _round_up(v, mult):
    return ((v + mult - 1) // mult) * mult


def _pe_kernel(x_ref, o_ref, *, num_freqs, include_input):
    # x_ref: (tile_rows, 128) lane-dense tile of the flattened input.
    # o_ref: (n_terms, tile_rows, 128); each term written as its own
    # full-vreg, unmasked lane-dense slab.
    x = x_ref[...].astype(jnp.float32)        # compute in f32, store in x.dtype
    k = 0
    if include_input:
        o_ref[0, :, :] = x_ref[...]
        k = 1
    s = c = None
    for i in range(num_freqs):
        if i % _ANCHOR_EVERY == 0:
            fx = float(2.0 ** i) * x          # exact power-of-two scale
            s = jnp.sin(fx)
            c = jnp.cos(fx)
        else:
            # power-of-two double-angle recurrence (cheap VPU ops, no polys)
            s, c = 2.0 * s * c, 1.0 - 2.0 * (s * s)
        o_ref[k + 2 * i, :, :] = s.astype(o_ref.dtype)
        o_ref[k + 2 * i + 1, :, :] = c.astype(o_ref.dtype)


def positional_encoding(x, num_freqs, include_input=True, torch_order=True):
    """Pallas implementation of PyTorch PositionalEncoding.forward."""
    n_terms = 2 * num_freqs + (1 if include_input else 0)
    orig_shape = x.shape
    d = orig_shape[-1]
    if n_terms == 0:
        return jnp.zeros((*orig_shape[:-1], 0), dtype=x.dtype)

    m = 1
    for sdim in orig_shape:
        m *= sdim                              # total element count = N_pos * d
    n_pos = m // d

    itemsize = jnp.dtype(x.dtype).itemsize
    row_align = max(8, 32 // itemsize)         # sublane quantum per dtype

    rows = _round_up(pl.cdiv(m, _LANE), row_align)

    # Tile sizing: double-buffered (input + n_terms output slabs) footprint.
    bytes_per_row = _LANE * itemsize * (n_terms + 1) * 2
    tile_rows = (_VMEM_FOOTPRINT_BUDGET // bytes_per_row) // row_align * row_align
    tile_rows = max(row_align, min(tile_rows, _MAX_TILE_ROWS, rows))

    # Full, equal-sized blocks (no ragged last block); >=2 blocks for medium
    # inputs so both v7x TensorCores get balanced work.
    n_blocks = pl.cdiv(rows, tile_rows)
    if n_blocks == 1 and rows >= 512:
        n_blocks = 2
    tile_rows = _round_up(pl.cdiv(rows, n_blocks), row_align)
    rows = n_blocks * tile_rows
    m_pad = rows * _LANE

    x_flat = x.reshape(-1)
    if m_pad != m:
        # Only the tiny logical tail is padded; skipped entirely when aligned.
        x_flat = jnp.pad(x_flat, (0, m_pad - m))
    x2d = x_flat.reshape(rows, _LANE)

    kernel = functools.partial(_pe_kernel, num_freqs=num_freqs,
                               include_input=include_input)

    n_anchors = -(-num_freqs // _ANCHOR_EVERY) if num_freqs else 0
    cost = pl.CostEstimate(
        flops=6 * num_freqs * m_pad,
        transcendentals=2 * n_anchors * m_pad,
        bytes_accessed=(n_terms + 1) * m_pad * itemsize,
    )

    out = pl.pallas_call(
        kernel,
        out_shape=jax.ShapeDtypeStruct((n_terms, rows, _LANE), x.dtype),
        grid_spec=pltpu.PrefetchScalarGridSpec(
            num_scalar_prefetch=0,
            grid=(n_blocks,),
            in_specs=[pl.BlockSpec((tile_rows, _LANE), lambda i: (i, 0))],
            out_specs=pl.BlockSpec((n_terms, tile_rows, _LANE),
                                   lambda i: (0, i, 0)),
        ),
        compiler_params=pltpu.CompilerParams(
            dimension_semantics=("parallel",),
            vmem_limit_bytes=_VMEM_LIMIT_BYTES,
        ),
        cost_estimate=cost,
    )(x2d)

    if not torch_order:
        # Kernel-native term-major layout (n_terms, n_pos, d): consumers can
        # permute their first Linear's weight rows once and skip the transpose
        # copy below (removes ~2/3 of HBM traffic for this op).
        return out.reshape(n_terms, m_pad)[:, :m].reshape(n_terms, n_pos, d)

    # Single layout-plumbing copy back to the exact PyTorch concat order:
    # out[t, p*d + e] -> result[..., t*d + e]
    out = (out.reshape(n_terms, m_pad)[:, :m]
              .reshape(n_terms, n_pos, d)
              .transpose(1, 0, 2)
              .reshape(*orig_shape[:-1], d * n_terms))
    return out


def _reference(x, num_freqs, include_input=True):
    freq_bands = 2.0 ** jnp.linspace(0.0, num_freqs - 1, num_freqs)
    out = []
    if include_input:
        out.append(x)
    for f in freq_bands:
        out.append(jnp.sin(f * x))
        out.append(jnp.cos(f * x))
    return jnp.concatenate(out, axis=-1)


if __name__ == "__main__":
    key = jax.random.PRNGKey(0)

    # Small NeRF-like input: batch=2, rays=8, input_dims=3, num_freqs=4.
    x = jax.random.normal(key, (2, 8, 3), dtype=jnp.float32)
    out = jax.block_until_ready(positional_encoding(x, 4, include_input=True))
    ref = _reference(x, 4, include_input=True)
    assert out.shape == (2, 8, 3 * (2 * 4 + 1)), out.shape
    assert jnp.allclose(out, ref, atol=1e-5, rtol=1e-5), "mismatch vs reference"

    # include_input=False path.
    out2 = jax.block_until_ready(positional_encoding(x, 3, include_input=False))
    ref2 = _reference(x, 3, include_input=False)
    assert out2.shape == ref2.shape, out2.shape
    assert jnp.allclose(out2, ref2, atol=1e-5, rtol=1e-5), "mismatch (no input)"

    # Slightly larger case exercising the anchor + double-angle recurrence
    # across more than _ANCHOR_EVERY bands.
    x3 = jax.random.normal(jax.random.PRNGKey(0), (4, 64, 3), dtype=jnp.float32)
    out3 = jax.block_until_ready(positional_encoding(x3, 6, include_input=True))
    ref3 = _reference(x3, 6, include_input=True)
    assert out3.shape == ref3.shape, out3.shape
    assert jnp.allclose(out3, ref3, atol=1e-5, rtol=1e-5), "mismatch (recurrence)"

    print("KERNEL_OK")
</pallas_src>

<mosaic_0001>
module attributes {stable_mosaic.version = 11 : i64} {
  func.func @_pe_kernel(%arg0: i32, %arg1: memref<8x128xf32, #tpu.memory_space<vmem>>, %arg2: memref<9x8x128xf32, #tpu.memory_space<vmem>>) attributes {dimension_semantics = [#tpu.dimension_semantics<parallel>], iteration_bounds = array<i64: 1>, scalar_prefetch = 0 : i64, scratch_operands = 0 : i64, tpu.core_type = #tpu.core_type<tc>, window_params = [{transform_indices = @transform_0, window_bounds = array<i64: 8, 128>}, {transform_indices = @transform_1, window_bounds = array<i64: 9, 8, 128>}]} {
    %c0 = arith.constant 0 : index
    %c0_0 = arith.constant 0 : index
    %0 = vector.load %arg1[%c0, %c0_0] : memref<8x128xf32, #tpu.memory_space<vmem>>, vector<8x128xf32>
    %c0_1 = arith.constant 0 : index
    %c0_2 = arith.constant 0 : index
    %1 = vector.load %arg1[%c0_1, %c0_2] : memref<8x128xf32, #tpu.memory_space<vmem>>, vector<8x128xf32>
    %c0_3 = arith.constant 0 : index
    %c0_4 = arith.constant 0 : index
    %c0_5 = arith.constant 0 : index
    %2 = vector.load %arg2[%c0_3, %c0_4, %c0_5] : memref<9x8x128xf32, #tpu.memory_space<vmem>>, vector<1x8x128xf32>
    %3 = vector.shape_cast %2 : vector<1x8x128xf32> to vector<8x128xf32>
    %4 = vector.shape_cast %1 : vector<8x128xf32> to vector<1x8x128xf32>
    tpu.vector_store %arg2[%c0_3, %c0_4, %c0_5], %4 {strides = array<i32>} : memref<9x8x128xf32, #tpu.memory_space<vmem>>, vector<1x8x128xf32>,
    %cst = arith.constant 1.000000e+00 : f32
    %5 = vector.broadcast %cst : f32 to vector<8x128xf32>
    %6 = arith.mulf %5, %0 : vector<8x128xf32>
    %7 = math.sin %6 : vector<8x128xf32>
    %8 = math.cos %6 : vector<8x128xf32>
    %c1 = arith.constant 1 : index
    %c0_6 = arith.constant 0 : index
    %c0_7 = arith.constant 0 : index
    %9 = vector.load %arg2[%c1, %c0_6, %c0_7] : memref<9x8x128xf32, #tpu.memory_space<vmem>>, vector<1x8x128xf32>
    %10 = vector.shape_cast %9 : vector<1x8x128xf32> to vector<8x128xf32>
    %11 = vector.shape_cast %7 : vector<8x128xf32> to vector<1x8x128xf32>
    tpu.vector_store %arg2[%c1, %c0_6, %c0_7], %11 {strides = array<i32>} : memref<9x8x128xf32, #tpu.memory_space<vmem>>, vector<1x8x128xf32>,
    %c2 = arith.constant 2 : index
    %c0_8 = arith.constant 0 : index
    %c0_9 = arith.constant 0 : index
    %12 = vector.load %arg2[%c2, %c0_8, %c0_9] : memref<9x8x128xf32, #tpu.memory_space<vmem>>, vector<1x8x128xf32>
    %13 = vector.shape_cast %12 : vector<1x8x128xf32> to vector<8x128xf32>
    %14 = vector.shape_cast %8 : vector<8x128xf32> to vector<1x8x128xf32>
    tpu.vector_store %arg2[%c2, %c0_8, %c0_9], %14 {strides = array<i32>} : memref<9x8x128xf32, #tpu.memory_space<vmem>>, vector<1x8x128xf32>,
    %cst_10 = arith.constant 2.000000e+00 : f32
    %15 = vector.broadcast %cst_10 : f32 to vector<8x128xf32>
    %16 = arith.mulf %15, %7 : vector<8x128xf32>
    %17 = arith.mulf %16, %8 : vector<8x128xf32>
    %18 = arith.mulf %7, %7 : vector<8x128xf32>
    %cst_11 = arith.constant 2.000000e+00 : f32
    %19 = vector.broadcast %cst_11 : f32 to vector<8x128xf32>
    %20 = arith.mulf %19, %18 : vector<8x128xf32>
    %cst_12 = arith.constant 1.000000e+00 : f32
    %21 = vector.broadcast %cst_12 : f32 to vector<8x128xf32>
    %22 = arith.subf %21, %20 : vector<8x128xf32>
    %c3 = arith.constant 3 : index
    %c0_13 = arith.constant 0 : index
    %c0_14 = arith.constant 0 : index
    %23 = vector.load %arg2[%c3, %c0_13, %c0_14] : memref<9x8x128xf32, #tpu.memory_space<vmem>>, vector<1x8x128xf32>
    %24 = vector.shape_cast %23 : vector<1x8x128xf32> to vector<8x128xf32>
    %25 = vector.shape_cast %17 : vector<8x128xf32> to vector<1x8x128xf32>
    tpu.vector_store %arg2[%c3, %c0_13, %c0_14], %25 {strides = array<i32>} : memref<9x8x128xf32, #tpu.memory_space<vmem>>, vector<1x8x128xf32>,
    %c4 = arith.constant 4 : index
    %c0_15 = arith.constant 0 : index
    %c0_16 = arith.constant 0 : index
    %26 = vector.load %arg2[%c4, %c0_15, %c0_16] : memref<9x8x128xf32, #tpu.memory_space<vmem>>, vector<1x8x128xf32>
    %27 = vector.shape_cast %26 : vector<1x8x128xf32> to vector<8x128xf32>
    %28 = vector.shape_cast %22 : vector<8x128xf32> to vector<1x8x128xf32>
    tpu.vector_store %arg2[%c4, %c0_15, %c0_16], %28 {strides = array<i32>} : memref<9x8x128xf32, #tpu.memory_space<vmem>>, vector<1x8x128xf32>,
    %cst_17 = arith.constant 2.000000e+00 : f32
    %29 = vector.broadcast %cst_17 : f32 to vector<8x128xf32>
    %30 = arith.mulf %29, %17 : vector<8x128xf32>
    %31 = arith.mulf %30, %22 : vector<8x128xf32>
    %32 = arith.mulf %17, %17 : vector<8x128xf32>
    %cst_18 = arith.constant 2.000000e+00 : f32
    %33 = vector.broadcast %cst_18 : f32 to vector<8x128xf32>
    %34 = arith.mulf %33, %32 : vector<8x128xf32>
    %cst_19 = arith.constant 1.000000e+00 : f32
    %35 = vector.broadcast %cst_19 : f32 to vector<8x128xf32>
    %36 = arith.subf %35, %34 : vector<8x128xf32>
    %c5 = arith.constant 5 : index
    %c0_20 = arith.constant 0 : index
    %c0_21 = arith.constant 0 : index
    %37 = vector.load %arg2[%c5, %c0_20, %c0_21] : memref<9x8x128xf32, #tpu.memory_space<vmem>>, vector<1x8x128xf32>
    %38 = vector.shape_cast %37 : vector<1x8x128xf32> to vector<8x128xf32>
    %39 = vector.shape_cast %31 : vector<8x128xf32> to vector<1x8x128xf32>
    tpu.vector_store %arg2[%c5, %c0_20, %c0_21], %39 {strides = array<i32>} : memref<9x8x128xf32, #tpu.memory_space<vmem>>, vector<1x8x128xf32>,
    %c6 = arith.constant 6 : index
    %c0_22 = arith.constant 0 : index
    %c0_23 = arith.constant 0 : index
    %40 = vector.load %arg2[%c6, %c0_22, %c0_23] : memref<9x8x128xf32, #tpu.memory_space<vmem>>, vector<1x8x128xf32>
    %41 = vector.shape_cast %40 : vector<1x8x128xf32> to vector<8x128xf32>
    %42 = vector.shape_cast %36 : vector<8x128xf32> to vector<1x8x128xf32>
    tpu.vector_store %arg2[%c6, %c0_22, %c0_23], %42 {strides = array<i32>} : memref<9x8x128xf32, #tpu.memory_space<vmem>>, vector<1x8x128xf32>,
    %cst_24 = arith.constant 2.000000e+00 : f32
    %43 = vector.broadcast %cst_24 : f32 to vector<8x128xf32>
    %44 = arith.mulf %43, %31 : vector<8x128xf32>
    %45 = arith.mulf %44, %36 : vector<8x128xf32>
    %46 = arith.mulf %31, %31 : vector<8x128xf32>
    %cst_25 = arith.constant 2.000000e+00 : f32
    %47 = vector.broadcast %cst_25 : f32 to vector<8x128xf32>
    %48 = arith.mulf %47, %46 : vector<8x128xf32>
    %cst_26 = arith.constant 1.000000e+00 : f32
    %49 = vector.broadcast %cst_26 : f32 to vector<8x128xf32>
    %50 = arith.subf %49, %48 : vector<8x128xf32>
    %c7 = arith.constant 7 : index
    %c0_27 = arith.constant 0 : index
    %c0_28 = arith.constant 0 : index
    %51 = vector.load %arg2[%c7, %c0_27, %c0_28] : memref<9x8x128xf32, #tpu.memory_space<vmem>>, vector<1x8x128xf32>
    %52 = vector.shape_cast %51 : vector<1x8x128xf32> to vector<8x128xf32>
    %53 = vector.shape_cast %45 : vector<8x128xf32> to vector<1x8x128xf32>
    tpu.vector_store %arg2[%c7, %c0_27, %c0_28], %53 {strides = array<i32>} : memref<9x8x128xf32, #tpu.memory_space<vmem>>, vector<1x8x128xf32>,
    %c8 = arith.constant 8 : index
    %c0_29 = arith.constant 0 : index
    %c0_30 = arith.constant 0 : index
    %54 = vector.load %arg2[%c8, %c0_29, %c0_30] : memref<9x8x128xf32, #tpu.memory_space<vmem>>, vector<1x8x128xf32>
    %55 = vector.shape_cast %54 : vector<1x8x128xf32> to vector<8x128xf32>
    %56 = vector.shape_cast %50 : vector<8x128xf32> to vector<1x8x128xf32>
    tpu.vector_store %arg2[%c8, %c0_29, %c0_30], %56 {strides = array<i32>} : memref<9x8x128xf32, #tpu.memory_space<vmem>>, vector<1x8x128xf32>,
    return
  }
  func.func @transform_0(%arg0: i32) -> (i32, i32) {
    %c0_i32 = arith.constant 0 : i32
    %c0_i32_0 = arith.constant 0 : i32
    return %arg0, %c0_i32 : i32, i32
  }
  func.func @transform_1(%arg0: i32) -> (i32, i32, i32) {
    %c0_i32 = arith.constant 0 : i32
    %c0_i32_0 = arith.constant 0 : i32
    %c0_i32_1 = arith.constant 0 : i32
    return %c0_i32, %arg0, %c0_i32_0 : i32, i32, i32
  }
}

</mosaic_0001>

<bundles_post_ra>
// kernel: tpu_custom_call.1
= control target key start
LH: loop header
LB: loop body
LE: loop exit
PB: predicated region body
PF: predicated region fallthrough
CT: control target
= control target key end

     0   :  { %6 = vsyncpa [#allocation3], 0  ;;  %s396_s0 = inlined_call_operand.hbm [shape: f32[8,128], index: 0, kind: input, shape index: {}]   ;;  %s397_s1 = inlined_call_operand.hbm [shape: f32[9,8,128], index: 1, kind: output, shape index: {}]  }
   0x1   :  { %7 = vsyncpa [#allocation4], 0  ;;  %s348_s6 = smov [#allocation2]  }
   0x2   :  { %s14_s7 = sshll.u32 %s348_s6, 4  ;;  %s15_s7 = int_to_ptr.vmem [resolvable:$true] %s14_s7 }
   0x3   :  { %s312_s8 = scalar_lea.vmem %s15_s7, 128  ;;  %p317_p1 = scmp.lt.s32.totalorder %s15_s7, %s15_s7 }
   0x4   :  { %p313_p0 = scmp.ne.s32.totalorder %s15_s7, %s312_s8  ;;  %p318_p2 = scmp.lt.s32.totalorder %s312_s8, %s312_s8 }
   0x6   :  { %p319_p3 = por %p318_p2, %p317_p1 }
   0x8   :  { %p320_p4 = pnand %p319_p3, %p313_p0 }
   0xa   :  { %323 = shalt.err (!%p320_p4)
}
   0xb   :  { %17 = dma.hbm_to_vmem [thread:$0]  %s396_s0, 128, %s15_s7, [#allocation3]  }
   0xc   :  { %344 = dma.done.wait [#allocation3], 128  }
   0xd   :  { %345 = vsyncadd [#allocation3], 4294967168  ;;  %v371_v0 = vld [vmem:[#allocation2] sm:$0xff]  ;;  %v349_v12 = vmov 683565275   ;;  %s355_s0 = smov [#allocation5]  }
   0xe   :  { %22 = vst [vmem:[#allocation5] sm:$0xff] %v371_v0  ;;  %v26_v1 = vand.u32 2139095040, %v371_v0  ;;  %v23_v3 = vand.u32 2147483647, %v371_v0  ;;  %v350_v14 = vmov 2475754826   ;;  %vm115_vm15 = vweird.f32 %v371_v0 }
   0xf   :  { %v351_v16 = vmov 2131351028   ;;  %v352_v18 = vmov 2102212464   ;;  %v353_v20 = vmov 920167782  }
  0x10   :  { %v27_v2 = vshrl.u32 %v26_v1, 23  ;;  %v30_v6 = vand.u32 8388607, %v23_v3  ;;  %v354_v27 = vmov 1326507024   ;;  %vm25_vm7 = vcmp.lt.s32.totalorder %v371_v0, 0 }
  0x11   :  { %vm24_vm8 = vcmp.le.f32.partialorder %v23_v3, 0.7853982  ;;  %s266_s11 = sshll.u32 %s355_s0, 4  ;;  %s267_s11 = int_to_ptr.vmem [resolvable:$true] %s266_s11 }
  0x12   :  { %v278_v4 = vadd.s32 4294967169, %v27_v2  ;;  %v31_v10 = vor.u32 8388608, %v30_v6  ;;  %s324_s12 = scalar_lea.vmem %s267_s11, 1152  ;;  %p329_p6 = scmp.lt.s32.totalorder %s267_s11, %s267_s11 }
  0x13   :  { %p325_p5 = scmp.ne.s32.totalorder %s267_s11, %s324_s12  ;;  %p330_p7 = scmp.lt.s32.totalorder %s324_s12, %s324_s12 }
  0x14   :  { %v33_v5 = vadd.s32 1, %v278_v4  ;;  %v71_v29 = vshll.u32 %v31_v10, 8 }
  0x15   :  { %p331_p8 = por %p330_p7, %p329_p6 }
  0x16   :  { %vm34_vm0 = vcmp.gt.s32.totalorder %v33_v5, 0 }
  0x17   :  { %v35_v7 = vsel %vm34_vm0, %v33_v5, 0  ;;  %p332_p9 = pnand %p331_p8, %p325_p5 }
  0x18   :  { %v37_v8 = vand.u32 31, %v35_v7  ;;  %v36_v9 = vshrl.u32 %v35_v7, 5 }
  0x1a   :  { %v38_v11 = vsub.s32 32, %v37_v8  ;;  %v40_v13 = vshll.u32 %v349_v12, %v37_v8  ;;  %v43_v15 = vshll.u32 %v350_v14, %v37_v8  ;;  %v46_v17 = vshll.u32 %v351_v16, %v37_v8 }
  0x1b   :  { %v49_v19 = vshll.u32 %v352_v18, %v37_v8  ;;  %v52_v21 = vshll.u32 %v353_v20, %v37_v8  ;;  %vm55_vm1 = vcmp.lt.s32.totalorder %v36_v9, 1  ;;  %vm58_vm2 = vcmp.lt.s32.totalorder %v36_v9, 4 }
  0x1c   :  { %v39_v22 = vshrl.u32 %v349_v12, %v38_v11  ;;  %v41_v23 = vshrl.u32 %v350_v14, %v38_v11  ;;  %v44_v24 = vshrl.u32 %v351_v16, %v38_v11  ;;  %v47_v25 = vshrl.u32 %v352_v18, %v38_v11 }
  0x1d   :  { %v50_v26 = vshrl.u32 %v353_v20, %v38_v11  ;;  %v53_v28 = vshrl.u32 %v354_v27, %v38_v11  ;;  %vm56_vm3 = vcmp.lt.s32.totalorder %v36_v9, 2  ;;  %vm57_vm4 = vcmp.lt.s32.totalorder %v36_v9, 3 }
  0x1e   :  { %v42_v30 = vor.u32 %v41_v23, %v40_v13  ;;  %v45_v31 = vor.u32 %v44_v24, %v43_v15  ;;  %v48_v32 = vor.u32 %v47_v25, %v46_v17 }
  0x1f   :  { %v51_v33 = vor.u32 %v50_v26, %v49_v19  ;;  %v54_v34 = vor.u32 %v53_v28, %v52_v21 }
  0x20   :  { %v59_v35 = vsel %vm55_vm1, %v39_v22, %v42_v30  ;;  %v60_v36 = vsel %vm58_vm2, %v48_v32, 2102212464  ;;  %v63_v37 = vsel %vm55_vm1, %v42_v30, %v45_v31  ;;  %v67_v38 = vsel %vm55_vm1, %v45_v31, %v48_v32 }
  0x21   :  { %v61_v39 = vsel %vm57_vm4, %v45_v31, %v60_v36  ;;  %v64_v40 = vsel %vm58_vm2, %v51_v33, 920167782  ;;  %v68_v41 = vsel %vm58_vm2, %v54_v34, 1326507024 }
  0x22   :  { %v65_v42 = vsel %vm57_vm4, %v48_v32, %v64_v40  ;;  %v69_v43 = vsel %vm57_vm4, %v51_v33, %v68_v41  ;;  %v62_v44 = vsel %vm56_vm3, %v59_v35, %v61_v39 }
  0x23   :  { %v66_v45 = vsel %vm56_vm3, %v63_v37, %v65_v42  ;;  %v70_v46 = vsel %vm56_vm3, %v67_v38, %v69_v43  ;;  %v78_v51 = vmul.u32 %v71_v29, %v62_v44 }
  0x24   :  { %v378_v47 = vmul.u32.u64.low %v71_v29, %v70_v46  ;;  %v379_v48 = vmul.u32.u64.high %v71_v29, %v70_v46, %v378_v47  ;;  %v381_v49 = vmul.u32.u64.low %v71_v29, %v66_v45  ;;  %v382_v50 = vmul.u32.u64.high %v71_v29, %v66_v45, %v381_v49 }
  0x26   :  { %vm80_vm5 = vc.u32 %v379_v48, %v381_v49  ;;  %v81_v52 = vadd.s32 1, %v382_v50  ;;  %v79_v63 = vadd.s32 %v381_v49, %v379_v48 }
  0x28   :  { %v82_v53 = vsel %vm80_vm5, %v81_v52, %v382_v50 }
  0x29   :  { %v83_v54 = vadd.s32 %v82_v53, %v78_v51 }
  0x2b   :  { %v84_v55 = vadd.s32 536870912, %v83_v54 }
  0x2d   :  { %v85_v56 = vshrl.u32 %v84_v55, 30 }
  0x2f   :  { %v86_v57 = vshll.u32 %v85_v56, 30  ;;  %v109_v14 = vsub.s32 4, %v85_v56 }
  0x31   :  { %v87_v58 = vsub.s32 %v83_v54, %v86_v57  ;;  %v110_v17 = vsel %vm25_vm7, %v109_v14, %v85_v56 }
  0x32   :  { %v112_v19 = vsel %vm24_vm8, 0, %v110_v17 }
  0x33   :  { %v89_v59 = vsub.s32 0, %v87_v58  ;;  %v116_v20 = vadd.s32 3, %v112_v19  ;;  %v220_v22 = vand.u32 3, %v112_v19 }
  0x35   :  { %v279_v60 = vmin.u32 %v89_v59, %v87_v58  ;;  %v117_v21 = vand.u32 3, %v116_v20  ;;  %vm225_vm10 = vcmp.eq.s32.totalorder %v220_v22, 2  ;;  %vm222_vm12 = vcmp.eq.s32.totalorder %v220_v22, 0 }
  0x36   :  { %vm221_vm14 = vcmp.lt.s32.totalorder %v220_v22, 2 }
  0x37   :  { %v91_v61 = vclz %v279_v60  ;;  %vm122_vm9 = vcmp.eq.s32.totalorder %v117_v21, 2  ;;  %vm119_vm11 = vcmp.eq.s32.totalorder %v117_v21, 0  ;;  %vm118_vm13 = vcmp.lt.s32.totalorder %v117_v21, 2 }
  0x39   :  { %v280_v62 = vadd.s32 4294967294, %v91_v61 }
  0x3b   :  { %vm281_vm6 = vcmp.lt.s32.totalorder %v280_v62, 0 }
  0x3c   :  { %v94_v1 = vsel %vm281_vm6, 0, %v280_v62 }
  0x3d   :  { %v95_v2 = vsub.s32 32, %v94_v1  ;;  %v96_v4 = vshll.u32 %v87_v58, %v94_v1  ;;  %v99_v5 = vsub.s32 4294967266, %v94_v1 }
  0x3f   :  { %v97_v6 = vshrl.u32 %v79_v63, %v95_v2  ;;  %v100_v7 = vadd.s32 127, %v99_v5 }
  0x41   :  { %v98_v8 = vor.u32 %v97_v6, %v96_v4  ;;  %v101_v9 = vshll.u32 %v100_v7, 23 }
  0x43   :  { %v102_v10 = vor.u32 4788187, %v101_v9  ;;  %v105_v11 = vcvt.s32.f32 %v98_v8 }
  0x45   :  { %v103_v12 = vand.u32 2147483647, %v102_v10 }
  0x47   :  { %v106_v13 = vmul.f32 %v105_v11, %v103_v12 }
  0x49   :  { %v107_v15 = vxor.u32 2147483648, %v106_v13 }
  0x4b   :  { %v108_v16 = vsel %vm25_vm7, %v107_v15, %v106_v13 }
  0x4c   :  { %v111_v18 = vsel %vm24_vm8, %v371_v0, %v108_v16 }
  0x4d   :  { %300 = vcosq.f32 %v111_v18 }
  0x4e   :  { %302 = vsinq.f32 %v111_v18 }
  0x5a   :  { %v301_v23 = vpop.eup %300 }
  0x5b   :  { %v303_v24 = vpop.eup %302  ;;  %v123_v25 = vxor.u32 2147483648, %v301_v23 }
  0x5c   :  { %v120_v3 = vxor.u32 2147483648, %v303_v24 }
  0x5d   :  { %v124_v26 = vsel %vm122_vm9, %v123_v25, %v303_v24  ;;  %v227_v27 = vsel %vm225_vm10, %v123_v25, %v303_v24 }
  0x5e   :  { %v121_v28 = vsel %vm119_vm11, %v301_v23, %v120_v3  ;;  %v224_v29 = vsel %vm222_vm12, %v301_v23, %v120_v3 }
  0x5f   :  { %v125_v30 = vsel %vm118_vm13, %v121_v28, %v124_v26  ;;  %v228_v31 = vsel %vm221_vm14, %v224_v29, %v227_v27 }
  0x60   :  { %v126_v32 = vsel %vm115_vm15, nan, %v125_v30  ;;  %v229_v33 = vsel %vm115_vm15, nan, %v228_v31 }
  0x61   :  { %231 = vst [vmem:[#allocation5 + $0x8] sm:$0xff] %v126_v32  ;;  %233 = vst [vmem:[#allocation5 + $0x10] sm:$0xff] %v229_v33  ;;  %v234_v34 = vmul.f32 2.0, %v126_v32  ;;  %v236_v35 = vmul.f32 %v126_v32, %v126_v32 }
  0x63   :  { %v235_v36 = vmul.f32 %v234_v34, %v229_v33  ;;  %v237_v37 = vmul.f32 2.0, %v236_v35 }
  0x65   :  { %240 = vst [vmem:[#allocation5 + $0x18] sm:$0xff] %v235_v36  ;;  %v238_v38 = vsub.f32 1.0, %v237_v37  ;;  %v243_v39 = vmul.f32 2.0, %v235_v36  ;;  %v245_v40 = vmul.f32 %v235_v36, %v235_v36 }
  0x67   :  { %242 = vst [vmem:[#allocation5 + $0x20] sm:$0xff] %v238_v38  ;;  %v244_v0 = vmul.f32 %v243_v39, %v238_v38  ;;  %v246_v41 = vmul.f32 2.0, %v245_v40 }
  0x69   :  { %249 = vst [vmem:[#allocation5 + $0x28] sm:$0xff] %v244_v0  ;;  %v247_v42 = vsub.f32 1.0, %v246_v41  ;;  %v252_v43 = vmul.f32 2.0, %v244_v0  ;;  %v254_v44 = vmul.f32 %v244_v0, %v244_v0 }
  0x6b   :  { %251 = vst [vmem:[#allocation5 + $0x30] sm:$0xff] %v247_v42  ;;  %v253_v45 = vmul.f32 %v252_v43, %v247_v42  ;;  %v255_v46 = vmul.f32 2.0, %v254_v44 }
  0x6d   :  { %258 = vst [vmem:[#allocation5 + $0x38] sm:$0xff] %v253_v45  ;;  %v256_v47 = vsub.f32 1.0, %v255_v46 }
  0x6f   :  { %260 = vst [vmem:[#allocation5 + $0x40] sm:$0xff] %v256_v47 }
  0x70   :  { %335 = shalt.err (!%p332_p9)
}
  0x71   :  { %s356_s13 = smov 128   ;;  %s357_s14 = smov 8  }
  0x72   :  { %272 = dma.vmem_to_hbm [thread:$0]  %s267_s11, 1152, %s397_s1, [#allocation4], %s356_s13, %s356_s13, %s357_s14  }
  0x73   :  { %346 = dma.done.wait [#allocation4], 1152  }
  0x74   :  { %347 = vsyncadd [#allocation4], 4294966144 }
  0x75   :  { %276 = vsyncpa [#allocation3], 1 }
  0x76   :  { %277 = vsyncpa [#allocation4], 1 }

</bundles_post_ra>
